<compile_context>
chip_gen: v6e
topology: v6e:2x2x1
jax: 0.10.0
libtpu: 0.0.40
codegen_flags: <defaults>
</compile_context>

<pallas_src>
import functools

import jax
import jax.numpy as jnp
from jax.experimental import pallas as pl
from jax.experimental.pallas import tpu as pltpu

_LANE = 128
_WIDTHS = (1024, 512, 256, 128)
_VALID_TYPES = ("relu", "relu6", "none")


def _apply_act(x, activation_type):
    if activation_type == "relu":
        return jnp.maximum(x, 0)
    elif activation_type == "relu6":
        return jnp.clip(x, 0, 6)
    elif activation_type == "none":
        return x
    else:
        raise ValueError("Unkown type %s" % activation_type)


def _act_kernel(x_ref, o_ref, *, activation_type):
    o_ref[...] = _apply_act(x_ref[...], activation_type)


def _sublane_pack(dtype):
    itemsize = jnp.dtype(dtype).itemsize
    # 8 sublanes for 4-byte, 16 for 2-byte (bf16), 32 for 1-byte (int8/fp8)
    return max(8 * (4 // max(itemsize, 1)), 8)


@functools.lru_cache(maxsize=None)
def _device_params():
    """Return (block_bytes, vmem_limit_bytes, min_grid_blocks) per generation."""
    kind = ""
    try:
        kind = jax.devices()[0].device_kind.lower()
    except Exception:
        pass

    if "v7" in kind or "7x" in kind:
        # 2 TensorCores, 64 MiB VMEM, ~3.2 TB/s HBM: big blocks + force a
        # multi-block grid so the parallel axis shards across both cores.
        block_bytes, vmem_limit, min_blocks = 8 << 20, 48 << 20, 4
    elif "v6" in kind:
        block_bytes, vmem_limit, min_blocks = 8 << 20, 64 << 20, 1
    elif "v5" in kind:
        block_bytes, vmem_limit, min_blocks = 4 << 20, 32 << 20, 1
    elif "v4" in kind:
        block_bytes, vmem_limit, min_blocks = 8 << 20, 64 << 20, 2  # megacore
    elif "v3" in kind or "v2" in kind:
        block_bytes, vmem_limit, min_blocks = 1 << 20, 8 << 20, 1
    else:
        block_bytes, vmem_limit, min_blocks = 4 << 20, 32 << 20, 1

    # Sanity-cap against physical VMEM if queryable.
    try:
        info = pltpu.get_tpu_info()
        cap = getattr(info, "vmem_capacity_bytes", None)
        if cap:
            vmem_limit = min(vmem_limit, (int(cap) * 3) // 4)
    except Exception:
        pass
    return block_bytes, vmem_limit, min_blocks


def _choose_width(total, pack):
    """Widest lane-dense W in _WIDTHS dividing `total`, preferring rows >= pack."""
    fallback = None
    for w in _WIDTHS:
        if total % w == 0:
            if fallback is None:
                fallback = w
            if total // w >= pack:
                return w
    return fallback


def _choose_tile_rows(rows, width, itemsize, pack, block_bytes, min_blocks):
    target = max(block_bytes // (width * itemsize), pack)
    target = (target // pack) * pack
    if min_blocks > 1 and rows >= min_blocks * pack:
        # Cap the tile so the grid has at least `min_blocks` steps (multi-core).
        cap = ((rows // min_blocks) // pack) * pack
        target = min(target, max(cap, pack))
    if rows <= target:
        return rows            # full extent — always a legal block
    return target              # pack-multiple; partial last block is masked


def _run_kernel_2d(x2d, activation_type, donate_input):
    rows, width = x2d.shape
    dtype = x2d.dtype
    itemsize = jnp.dtype(dtype).itemsize
    pack = _sublane_pack(dtype)
    block_bytes, vmem_limit, min_blocks = _device_params()

    tile_rows = _choose_tile_rows(rows, width, itemsize, pack, block_bytes, min_blocks)
    grid = (pl.cdiv(rows, tile_rows),)

    extra = {}
    if donate_input:
        # Only alias when the caller actually donates the buffer; otherwise XLA
        # inserts a defensive full copy of the input (pure overhead here).
        extra["input_output_aliases"] = {0: 0}

    return pl.pallas_call(
        functools.partial(_act_kernel, activation_type=activation_type),
        out_shape=jax.ShapeDtypeStruct((rows, width), dtype),
        grid_spec=pltpu.PrefetchScalarGridSpec(
            num_scalar_prefetch=0,
            grid=grid,
            in_specs=[pl.BlockSpec((tile_rows, width), lambda i: (i, 0))],
            out_specs=pl.BlockSpec((tile_rows, width), lambda i: (i, 0)),
        ),
        compiler_params=pltpu.CompilerParams(
            dimension_semantics=("parallel",),
            vmem_limit_bytes=vmem_limit,
        ),
        **extra,
    )(x2d)


@functools.partial(jax.jit, static_argnames=("activation_type", "donate_input"))
def activation(x, activation_type="relu", donate_input=False):
    """Elementwise activation matching the PyTorch `Activation` module.

    Accepts any shape/dtype; preserves both.  Set donate_input=True only when
    the caller donates `x` (mirrors PyTorch's inplace=True).
    """
    if activation_type not in _VALID_TYPES:
        raise ValueError("Unkown type %s" % activation_type)

    # Identity: skip the HBM round trip entirely.
    if activation_type == "none":
        return x

    total = x.size
    if total == 0:
        return x

    if total % _LANE != 0:
        # Rare misaligned case: a kernel would need pad/slice/concat copies
        # (2-3x HBM traffic); a fused XLA elementwise is already at the HBM
        # roofline, so just use it.
        return _apply_act(x, activation_type)

    pack = _sublane_pack(x.dtype)
    width = _choose_width(total, pack)
    rows = total // width
    out2d = _run_kernel_2d(x.reshape(rows, width), activation_type, donate_input)
    return out2d.reshape(x.shape)


if __name__ == "__main__":
    key = jax.random.PRNGKey(0)

    # NCHW input, same convention as the PyTorch module
    x = jax.random.normal(key, (2, 4, 16, 16), dtype=jnp.float32) * 4.0

    y_relu = jax.block_until_ready(activation(x, "relu"))
    y_relu6 = jax.block_until_ready(activation(x, "relu6"))
    y_none = jax.block_until_ready(activation(x, "none"))

    assert y_relu.shape == x.shape and y_relu.dtype == x.dtype
    assert jnp.allclose(y_relu, jnp.maximum(x, 0.0))
    assert jnp.allclose(y_relu6, jnp.clip(x, 0.0, 6.0))
    assert jnp.allclose(y_none, x)

    # Donated-buffer variant (in-place style) still produces correct values.
    y_relu_d = jax.block_until_ready(activation(x, "relu", donate_input=True))
    assert jnp.allclose(y_relu_d, jnp.maximum(x, 0.0))

    # Moderate conv-like shape: exercises multi-block grid / masked partial
    # block on multi-core parts (rows not a multiple of the sublane pack).
    x_mid = jax.random.normal(jax.random.PRNGKey(4), (2, 8, 56, 56), dtype=jnp.float32) * 4.0
    y_mid = jax.block_until_ready(activation(x_mid, "relu6"))
    assert jnp.allclose(y_mid, jnp.clip(x_mid, 0.0, 6.0))

    # Misaligned size (exercises the fused-XLA fallback path)
    x_odd = jax.random.normal(jax.random.PRNGKey(1), (2, 3, 67), dtype=jnp.float32) * 4.0
    y_odd = jax.block_until_ready(activation(x_odd, "relu6"))
    assert jnp.allclose(y_odd, jnp.clip(x_odd, 0.0, 6.0))

    # Tiny size (< 128 elements: fallback path)
    x_tiny = jax.random.normal(jax.random.PRNGKey(2), (5, 7), dtype=jnp.float32) * 4.0
    y_tiny = jax.block_until_ready(activation(x_tiny, "relu"))
    assert jnp.allclose(y_tiny, jnp.maximum(x_tiny, 0.0))

    # bf16 path (dtype-aware sublane packing / width choice)
    x_bf16 = (jax.random.normal(jax.random.PRNGKey(3), (2, 4, 16, 16)) * 4.0).astype(jnp.bfloat16)
    y_bf16 = jax.block_until_ready(activation(x_bf16, "relu"))
    assert y_bf16.dtype == jnp.bfloat16
    assert jnp.allclose(y_bf16.astype(jnp.float32),
                        jnp.maximum(x_bf16.astype(jnp.float32), 0.0))

    print("KERNEL_OK")
</pallas_src>

<mosaic_0001>
module attributes {stable_mosaic.version = 11 : i64} {
  func.func @_act_kernel(%arg0: i32, %arg1: memref<8x256xf32, #tpu.memory_space<vmem>>, %arg2: memref<8x256xf32, #tpu.memory_space<vmem>>) attributes {dimension_semantics = [#tpu.dimension_semantics<parallel>], iteration_bounds = array<i64: 1>, scalar_prefetch = 0 : i64, scratch_operands = 0 : i64, tpu.core_type = #tpu.core_type<tc>, window_params = [{transform_indices = @transform_0, window_bounds = array<i64: 8, 256>}, {transform_indices = @transform_1, window_bounds = array<i64: 8, 256>}]} {
    %c0 = arith.constant 0 : index
    %c0_0 = arith.constant 0 : index
    %0 = vector.load %arg1[%c0, %c0_0] : memref<8x256xf32, #tpu.memory_space<vmem>>, vector<8x256xf32>
    %cst = arith.constant 0.000000e+00 : f32
    %1 = vector.broadcast %cst : f32 to vector<8x256xf32>
    %2 = arith.maximumf %0, %1 : vector<8x256xf32>
    %c0_1 = arith.constant 0 : index
    %c0_2 = arith.constant 0 : index
    %3 = vector.load %arg2[%c0_1, %c0_2] : memref<8x256xf32, #tpu.memory_space<vmem>>, vector<8x256xf32>
    tpu.vector_store %arg2[%c0_1, %c0_2], %2 {strides = array<i32>} : memref<8x256xf32, #tpu.memory_space<vmem>>, vector<8x256xf32>,
    return
  }
  func.func @transform_0(%arg0: i32) -> (i32, i32) {
    %c0_i32 = arith.constant 0 : i32
    %c0_i32_0 = arith.constant 0 : i32
    return %arg0, %c0_i32 : i32, i32
  }
  func.func @transform_1(%arg0: i32) -> (i32, i32) {
    %c0_i32 = arith.constant 0 : i32
    %c0_i32_0 = arith.constant 0 : i32
    return %arg0, %c0_i32 : i32, i32
  }
}

</mosaic_0001>

<bundles_post_ra>
// kernel: activation.1
= control target key start
LH: loop header
LB: loop body
LE: loop exit
PB: predicated region body
PF: predicated region fallthrough
CT: control target
= control target key end

     0   :  { %s40_s0 = inlined_call_operand.vmem [shape: f32[8,256], index: 0, kind: input, shape index: {}]   ;;  %s41_s1 = inlined_call_operand.vmem [shape: f32[8,256], index: 1, kind: output, shape index: {}]  }
   0x1   :  { %v8_v0 = vld [vmem:[%s40_s0] sm:$0xff]  ;;  %v9_v1 = vld [vmem:[%s40_s0 + $0x8] sm:$0xff] }
   0x2   :  { %v10_v2 = vmax.f32 %v8_v0, 0.0  ;;  %v11_v3 = vmax.f32 %v9_v1, 0.0 }
   0x4   :  { %12 = vst [vmem:[%s41_s1] sm:$0xff] %v10_v2  ;;  %13 = vst [vmem:[%s41_s1 + $0x8] sm:$0xff] %v11_v3 }

</bundles_post_ra>
